<compile_context>
chip_gen: v7x
topology: tpu7x:2x2x1
jax: 0.10.0
libtpu: 0.0.40
codegen_flags: <defaults>
</compile_context>

<pallas_src>
import jax
import jax.numpy as jnp
from jax import lax
from jax.experimental import pallas as pl
from jax.experimental.pallas import tpu as pltpu

LANE = 128      # lane width (last dim granularity)
SUBLANE = 8     # f32 sublane granularity (second-to-last dim)


def _round_up(x, m):
    return ((x + m - 1) // m) * m


def prepare_params(weights, biases):
    """One-time (init-time) packing: pad to lane width and transpose to (in_p, out_p).

    weights[i]: (out_features, in_features)  (PyTorch Linear layout)
    biases[i]:  (out_features,)
    """
    packed = []
    for W, b in zip(weights, biases):
        out_f, in_f = W.shape
        in_p = _round_up(in_f, LANE)
        out_p = _round_up(out_f, LANE)
        Wt = jnp.zeros((in_p, out_p), W.dtype).at[:in_f, :out_f].set(W.T)
        bp = jnp.zeros((1, out_p), b.dtype).at[0, :out_f].set(b)
        packed.append((Wt, bp))
    return packed


def _make_classup_kernel(n_lin, out_dim_true, use_sigmoid, neg_slope):
    def kernel(*refs):
        x_ref = refs[0]
        w_refs = refs[1:1 + n_lin]
        b_refs = refs[1 + n_lin:1 + 2 * n_lin]
        o_ref = refs[1 + 2 * n_lin]

        h = x_ref[...].astype(jnp.float32)
        for li in range(n_lin):
            h = jnp.dot(h, w_refs[li][...].astype(jnp.float32),
                        preferred_element_type=jnp.float32)
            h = h + b_refs[li][...]
            if li < n_lin - 1:                       # LeakyReLU after all but last
                h = jnp.where(h > 0, h, neg_slope * h)

        if use_sigmoid:
            h = jax.nn.sigmoid(h)

        # Mask the padded logit columns so they do not contribute to the softmax.
        cols = lax.broadcasted_iota(jnp.int32, h.shape, 1)
        h = jnp.where(cols < out_dim_true, h, jnp.float32(-1e30))

        # Numerically-stable softmax over the feature axis (dim=1 in PyTorch).
        m = jnp.max(h, axis=-1, keepdims=True)
        e = jnp.exp(h - m)
        s = jnp.sum(e, axis=-1, keepdims=True)
        o_ref[...] = (e / s).astype(o_ref.dtype)

    return kernel


def class_up_forward(x, packed_params, out_dim_true, use_sigmoid=False,
                     neg_slope=0.01, block_m=128):
    """x: (N, dim) or (N, dim, 1, 1); packed_params from prepare_params()."""
    N = x.shape[0]
    x2d = x.reshape(N, -1)                           # == squeeze(-1).squeeze(-1)
    dim = x2d.shape[1]

    in_p = packed_params[0][0].shape[0]
    out_p = packed_params[-1][0].shape[1]
    assert dim <= in_p

    # Pad batch to sublane granularity and choose a batch tile.
    Np = _round_up(N, SUBLANE)
    tm = Np if Np <= block_m else block_m
    Np = _round_up(Np, tm)
    x_pad = jnp.zeros((Np, in_p), x2d.dtype).at[:N, :dim].set(x2d)

    n_lin = len(packed_params)
    ws = [p[0] for p in packed_params]
    bs = [p[1] for p in packed_params]

    in_specs = [pl.BlockSpec((tm, in_p), lambda i: (i, 0))]
    # Weights / biases: constant block index -> loaded once, resident across tiles.
    for W in ws:
        in_specs.append(pl.BlockSpec(W.shape, lambda i: (0, 0)))
    for b in bs:
        in_specs.append(pl.BlockSpec(b.shape, lambda i: (0, 0)))

    out_pad = pl.pallas_call(
        _make_classup_kernel(n_lin, out_dim_true, use_sigmoid, neg_slope),
        out_shape=jax.ShapeDtypeStruct((Np, out_p), x2d.dtype),
        grid_spec=pltpu.PrefetchScalarGridSpec(
            num_scalar_prefetch=0,
            grid=(Np // tm,),
            in_specs=in_specs,
            out_specs=pl.BlockSpec((tm, out_p), lambda i: (i, 0)),
        ),
        compiler_params=pltpu.CompilerParams(
            dimension_semantics=("parallel",),
        ),
    )(x_pad, *ws, *bs)

    return out_pad[:N, :out_dim_true]


def class_up_reference(x, weights, biases, use_sigmoid, neg_slope=0.01):
    """Pure-JAX reference matching the PyTorch module."""
    h = x.reshape(x.shape[0], -1)
    n_lin = len(weights)
    for i in range(n_lin):
        h = h @ weights[i].T + biases[i]
        if i < n_lin - 1:
            h = jnp.where(h > 0, h, neg_slope * h)
    if use_sigmoid:
        h = jax.nn.sigmoid(h)
    return jax.nn.softmax(h, axis=1)


if __name__ == "__main__":
    # ClassUp(dim=16, depth=2, hidden_dim=32, use_sigmoid=False, out_dim=None)
    N, dim, hidden, depth = 2, 16, 32, 2
    use_sigmoid = False
    out_dim_true = dim  # out_dim=None -> dim

    key = jax.random.PRNGKey(0)
    kx, key = jax.random.split(key)
    x = jax.random.normal(kx, (N, dim, 1, 1), dtype=jnp.float32)

    # PyTorch-style Linear init (uniform with bound 1/sqrt(fan_in)), PyTorch layout.
    layer_dims = [(dim, hidden)] + [(hidden, hidden)] * depth + [(hidden, out_dim_true)]
    weights, biases = [], []
    for fan_in, fan_out in layer_dims:
        kw, kb, key = jax.random.split(key, 3)
        bound = 1.0 / (fan_in ** 0.5)
        weights.append(jax.random.uniform(kw, (fan_out, fan_in), jnp.float32, -bound, bound))
        biases.append(jax.random.uniform(kb, (fan_out,), jnp.float32, -bound, bound))

    packed = prepare_params(weights, biases)  # one-time padding + transpose

    out = class_up_forward(x, packed, out_dim_true=out_dim_true, use_sigmoid=use_sigmoid)
    out = jax.block_until_ready(out)

    ref = class_up_reference(x, weights, biases, use_sigmoid)
    assert out.shape == (N, out_dim_true)
    assert jnp.allclose(jnp.sum(out, axis=1), 1.0, atol=1e-5)
    assert jnp.allclose(out, ref, atol=1e-4, rtol=1e-4)

    print("KERNEL_OK")
</pallas_src>

<mosaic_0001>
module attributes {stable_mosaic.version = 11 : i64} {
  func.func @kernel(%arg0: i32, %arg1: memref<8x128xf32, #tpu.memory_space<vmem>>, %arg2: memref<128x128xf32, #tpu.memory_space<vmem>>, %arg3: memref<128x128xf32, #tpu.memory_space<vmem>>, %arg4: memref<128x128xf32, #tpu.memory_space<vmem>>, %arg5: memref<128x128xf32, #tpu.memory_space<vmem>>, %arg6: memref<1x128xf32, #tpu.memory_space<vmem>>, %arg7: memref<1x128xf32, #tpu.memory_space<vmem>>, %arg8: memref<1x128xf32, #tpu.memory_space<vmem>>, %arg9: memref<1x128xf32, #tpu.memory_space<vmem>>, %arg10: memref<8x128xf32, #tpu.memory_space<vmem>>) attributes {dimension_semantics = [#tpu.dimension_semantics<parallel>], iteration_bounds = array<i64: 1>, scalar_prefetch = 0 : i64, scratch_operands = 0 : i64, tpu.core_type = #tpu.core_type<tc>, window_params = [{transform_indices = @transform_0, window_bounds = array<i64: 8, 128>}, {pipeline_mode = #tpu.pipeline_mode<synchronous>, transform_indices = @transform_1, window_bounds = array<i64: 128, 128>}, {pipeline_mode = #tpu.pipeline_mode<synchronous>, transform_indices = @transform_2, window_bounds = array<i64: 128, 128>}, {pipeline_mode = #tpu.pipeline_mode<synchronous>, transform_indices = @transform_3, window_bounds = array<i64: 128, 128>}, {pipeline_mode = #tpu.pipeline_mode<synchronous>, transform_indices = @transform_4, window_bounds = array<i64: 128, 128>}, {pipeline_mode = #tpu.pipeline_mode<synchronous>, transform_indices = @transform_5, window_bounds = array<i64: 1, 128>}, {pipeline_mode = #tpu.pipeline_mode<synchronous>, transform_indices = @transform_6, window_bounds = array<i64: 1, 128>}, {pipeline_mode = #tpu.pipeline_mode<synchronous>, transform_indices = @transform_7, window_bounds = array<i64: 1, 128>}, {pipeline_mode = #tpu.pipeline_mode<synchronous>, transform_indices = @transform_8, window_bounds = array<i64: 1, 128>}, {transform_indices = @transform_9, window_bounds = array<i64: 8, 128>}]} {
    %c0 = arith.constant 0 : index
    %c0_0 = arith.constant 0 : index
    %0 = vector.load %arg1[%c0, %c0_0] : memref<8x128xf32, #tpu.memory_space<vmem>>, vector<8x128xf32>
    %c0_1 = arith.constant 0 : index
    %c0_2 = arith.constant 0 : index
    %1 = vector.load %arg2[%c0_1, %c0_2] : memref<128x128xf32, #tpu.memory_space<vmem>>, vector<128x128xf32>
    %cst = arith.constant dense<0.000000e+00> : vector<8x128xf32>
    %2 = tpu.matmul %0, %1, %cst {dimension_numbers = #tpu.dot_dimension_numbers<[1], [0], [0], [1], [0, 0, 1, 1], [], []>} : vector<8x128xf32>, vector<128x128xf32>, vector<8x128xf32> -> vector<8x128xf32>
    %c0_3 = arith.constant 0 : index
    %c0_4 = arith.constant 0 : index
    %3 = vector.load %arg6[%c0_3, %c0_4] : memref<1x128xf32, #tpu.memory_space<vmem>>, vector<1x128xf32>
    %4 = vector.broadcast %3 : vector<1x128xf32> to vector<8x128xf32>
    %5 = arith.addf %2, %4 : vector<8x128xf32>
    %cst_5 = arith.constant 0.000000e+00 : f32
    %6 = vector.broadcast %cst_5 : f32 to vector<8x128xf32>
    %7 = arith.cmpf ogt, %5, %6 : vector<8x128xf32>
    %cst_6 = arith.constant 0.00999999977 : f32
    %8 = vector.broadcast %cst_6 : f32 to vector<8x128xf32>
    %9 = arith.mulf %8, %5 : vector<8x128xf32>
    %10 = arith.select %7, %5, %9 : vector<8x128xi1>, vector<8x128xf32>
    %c0_7 = arith.constant 0 : index
    %c0_8 = arith.constant 0 : index
    %11 = vector.load %arg3[%c0_7, %c0_8] : memref<128x128xf32, #tpu.memory_space<vmem>>, vector<128x128xf32>
    %cst_9 = arith.constant dense<0.000000e+00> : vector<8x128xf32>
    %12 = tpu.matmul %10, %11, %cst_9 {dimension_numbers = #tpu.dot_dimension_numbers<[1], [0], [0], [1], [0, 0, 1, 1], [], []>} : vector<8x128xf32>, vector<128x128xf32>, vector<8x128xf32> -> vector<8x128xf32>
    %c0_10 = arith.constant 0 : index
    %c0_11 = arith.constant 0 : index
    %13 = vector.load %arg7[%c0_10, %c0_11] : memref<1x128xf32, #tpu.memory_space<vmem>>, vector<1x128xf32>
    %14 = vector.broadcast %13 : vector<1x128xf32> to vector<8x128xf32>
    %15 = arith.addf %12, %14 : vector<8x128xf32>
    %cst_12 = arith.constant 0.000000e+00 : f32
    %16 = vector.broadcast %cst_12 : f32 to vector<8x128xf32>
    %17 = arith.cmpf ogt, %15, %16 : vector<8x128xf32>
    %cst_13 = arith.constant 0.00999999977 : f32
    %18 = vector.broadcast %cst_13 : f32 to vector<8x128xf32>
    %19 = arith.mulf %18, %15 : vector<8x128xf32>
    %20 = arith.select %17, %15, %19 : vector<8x128xi1>, vector<8x128xf32>
    %c0_14 = arith.constant 0 : index
    %c0_15 = arith.constant 0 : index
    %21 = vector.load %arg4[%c0_14, %c0_15] : memref<128x128xf32, #tpu.memory_space<vmem>>, vector<128x128xf32>
    %cst_16 = arith.constant dense<0.000000e+00> : vector<8x128xf32>
    %22 = tpu.matmul %20, %21, %cst_16 {dimension_numbers = #tpu.dot_dimension_numbers<[1], [0], [0], [1], [0, 0, 1, 1], [], []>} : vector<8x128xf32>, vector<128x128xf32>, vector<8x128xf32> -> vector<8x128xf32>
    %c0_17 = arith.constant 0 : index
    %c0_18 = arith.constant 0 : index
    %23 = vector.load %arg8[%c0_17, %c0_18] : memref<1x128xf32, #tpu.memory_space<vmem>>, vector<1x128xf32>
    %24 = vector.broadcast %23 : vector<1x128xf32> to vector<8x128xf32>
    %25 = arith.addf %22, %24 : vector<8x128xf32>
    %cst_19 = arith.constant 0.000000e+00 : f32
    %26 = vector.broadcast %cst_19 : f32 to vector<8x128xf32>
    %27 = arith.cmpf ogt, %25, %26 : vector<8x128xf32>
    %cst_20 = arith.constant 0.00999999977 : f32
    %28 = vector.broadcast %cst_20 : f32 to vector<8x128xf32>
    %29 = arith.mulf %28, %25 : vector<8x128xf32>
    %30 = arith.select %27, %25, %29 : vector<8x128xi1>, vector<8x128xf32>
    %c0_21 = arith.constant 0 : index
    %c0_22 = arith.constant 0 : index
    %31 = vector.load %arg5[%c0_21, %c0_22] : memref<128x128xf32, #tpu.memory_space<vmem>>, vector<128x128xf32>
    %cst_23 = arith.constant dense<0.000000e+00> : vector<8x128xf32>
    %32 = tpu.matmul %30, %31, %cst_23 {dimension_numbers = #tpu.dot_dimension_numbers<[1], [0], [0], [1], [0, 0, 1, 1], [], []>} : vector<8x128xf32>, vector<128x128xf32>, vector<8x128xf32> -> vector<8x128xf32>
    %c0_24 = arith.constant 0 : index
    %c0_25 = arith.constant 0 : index
    %33 = vector.load %arg9[%c0_24, %c0_25] : memref<1x128xf32, #tpu.memory_space<vmem>>, vector<1x128xf32>
    %34 = vector.broadcast %33 : vector<1x128xf32> to vector<8x128xf32>
    %35 = arith.addf %32, %34 : vector<8x128xf32>
    %36 = tpu.iota {dimensions = array<i32: 1>} : vector<8x128xi32>
    %c16_i32 = arith.constant 16 : i32
    %37 = vector.broadcast %c16_i32 : i32 to vector<8x128xi32>
    %38 = arith.cmpi slt, %36, %37 : vector<8x128xi32>
    %cst_26 = arith.constant -1.000000e+30 : f32
    %39 = vector.broadcast %cst_26 : f32 to vector<8x128xf32>
    %40 = arith.select %38, %35, %39 : vector<8x128xi1>, vector<8x128xf32>
    %cst_27 = arith.constant dense<0xFF800000> : vector<8xf32>
    %41 = vector.multi_reduction <maximumf>, %40, %cst_27 [1] : vector<8x128xf32> to vector<8xf32>
    %42 = vector.shape_cast %41 : vector<8xf32> to vector<8x1xf32>
    %43 = vector.broadcast %42 : vector<8x1xf32> to vector<8x128xf32>
    %44 = arith.subf %40, %43 : vector<8x128xf32>
    %45 = math.exp %44 : vector<8x128xf32>
    %cst_28 = arith.constant dense<0.000000e+00> : vector<8xf32>
    %46 = vector.multi_reduction <add>, %45, %cst_28 [1] : vector<8x128xf32> to vector<8xf32>
    %47 = vector.shape_cast %46 : vector<8xf32> to vector<8x1xf32>
    %48 = vector.broadcast %47 : vector<8x1xf32> to vector<8x128xf32>
    %49 = arith.divf %45, %48 : vector<8x128xf32>
    %c0_29 = arith.constant 0 : index
    %c0_30 = arith.constant 0 : index
    %50 = vector.load %arg10[%c0_29, %c0_30] : memref<8x128xf32, #tpu.memory_space<vmem>>, vector<8x128xf32>
    tpu.vector_store %arg10[%c0_29, %c0_30], %49 {strides = array<i32>} : memref<8x128xf32, #tpu.memory_space<vmem>>, vector<8x128xf32>,
    return
  }
  func.func @transform_0(%arg0: i32) -> (i32, i32) {
    %c0_i32 = arith.constant 0 : i32
    %c0_i32_0 = arith.constant 0 : i32
    return %arg0, %c0_i32 : i32, i32
  }
  func.func @transform_1(%arg0: i32) -> (i32, i32) {
    %c0_i32 = arith.constant 0 : i32
    %c0_i32_0 = arith.constant 0 : i32
    %c0_i32_1 = arith.constant 0 : i32
    return %c0_i32, %c0_i32_0 : i32, i32
  }
  func.func @transform_2(%arg0: i32) -> (i32, i32) {
    %c0_i32 = arith.constant 0 : i32
    %c0_i32_0 = arith.constant 0 : i32
    %c0_i32_1 = arith.constant 0 : i32
    return %c0_i32, %c0_i32_0 : i32, i32
  }
  func.func @transform_3(%arg0: i32) -> (i32, i32) {
    %c0_i32 = arith.constant 0 : i32
    %c0_i32_0 = arith.constant 0 : i32
    %c0_i32_1 = arith.constant 0 : i32
    return %c0_i32, %c0_i32_0 : i32, i32
  }
  func.func @transform_4(%arg0: i32) -> (i32, i32) {
    %c0_i32 = arith.constant 0 : i32
    %c0_i32_0 = arith.constant 0 : i32
    %c0_i32_1 = arith.constant 0 : i32
    return %c0_i32, %c0_i32_0 : i32, i32
  }
  func.func @transform_5(%arg0: i32) -> (i32, i32) {
    %c0_i32 = arith.constant 0 : i32
    %c0_i32_0 = arith.constant 0 : i32
    %c0_i32_1 = arith.constant 0 : i32
    return %c0_i32, %c0_i32_0 : i32, i32
  }
  func.func @transform_6(%arg0: i32) -> (i32, i32) {
    %c0_i32 = arith.constant 0 : i32
    %c0_i32_0 = arith.constant 0 : i32
    %c0_i32_1 = arith.constant 0 : i32
    return %c0_i32, %c0_i32_0 : i32, i32
  }
  func.func @transform_7(%arg0: i32) -> (i32, i32) {
    %c0_i32 = arith.constant 0 : i32
    %c0_i32_0 = arith.constant 0 : i32
    %c0_i32_1 = arith.constant 0 : i32
    return %c0_i32, %c0_i32_0 : i32, i32
  }
  func.func @transform_8(%arg0: i32) -> (i32, i32) {
    %c0_i32 = arith.constant 0 : i32
    %c0_i32_0 = arith.constant 0 : i32
    %c0_i32_1 = arith.constant 0 : i32
    return %c0_i32, %c0_i32_0 : i32, i32
  }
  func.func @transform_9(%arg0: i32) -> (i32, i32) {
    %c0_i32 = arith.constant 0 : i32
    %c0_i32_0 = arith.constant 0 : i32
    return %arg0, %c0_i32 : i32, i32
  }
}

</mosaic_0001>

<bundles_post_ra>
// kernel: tpu_custom_call.1
= control target key start
LH: loop header
LB: loop body
LE: loop exit
PB: predicated region body
PF: predicated region fallthrough
CT: control target
= control target key end

     0   :  { %14 = vsyncpa [#allocation3], 0  ;;  %s1172_s0 = inlined_call_operand.hbm [shape: f32[8,128], index: 0, kind: input, shape index: {}]   ;;  %s1173_s1 = inlined_call_operand.hbm [shape: f32[128,128], index: 1, kind: input, shape index: {}]   ;;  %s1174_s2 = inlined_call_operand.hbm [shape: f32[128,128], index: 2, kind: input, shape index: {}]   ;;  %s1175_s3 = inlined_call_operand.hbm [shape: f32[128,128], index: 3, kind: input, shape index: {}]   ;;  %s1176_s4 = inlined_call_operand.hbm [shape: f32[128,128], index: 4, kind: input, shape index: {}]   ;;  %s1177_s5 = inlined_call_operand.vmem [shape: f32[1,128], index: 5, kind: input, shape index: {}]   ;;  %s1178_s6 = inlined_call_operand.vmem [shape: f32[1,128], index: 6, kind: input, shape index: {}]   ;;  %s1179_s7 = inlined_call_operand.vmem [shape: f32[1,128], index: 7, kind: input, shape index: {}]   ;;  %s1180_s8 = inlined_call_operand.vmem [shape: f32[1,128], index: 8, kind: input, shape index: {}]   ;;  %s1181_s9 = inlined_call_operand.hbm [shape: f32[8,128], index: 9, kind: output, shape index: {}]  }
   0x1   :  { %15 = vsyncpa [#allocation6], 0 }
   0x2   :  { %16 = vsyncpa [#allocation9], 0 }
   0x3   :  { %17 = vsyncpa [#allocation4], 0  ;;  %s975_s30 = smov [#allocation5]   ;;  %s835_s13 = scalar_lea.hbm %s1173_s1, 2048 }
   0x4   :  { %s33_s10 = sshll.u32 %s975_s30, 4  ;;  %p836_p0 = scmp.ne.s32.totalorder %s1173_s1, %s835_s13  ;;  %s34_s10 = int_to_ptr.vmem [resolvable:$true] %s33_s10 }
   0x5   :  { %p839_p1 = scmp.lt.u32.totalorder %s835_s13, %s1173_s1 }
   0x7   :  { %p841_p2 = pnand %p839_p1, %p836_p0 }
   0x9   :  { %844 = shalt.err (!%p841_p2)
}
   0xa   :  { %s845_s18 = scalar_lea.vmem %s34_s10, 2048  ;;  %p850_p4 = scmp.lt.s32.totalorder %s34_s10, %s34_s10 }
   0xb   :  { %p846_p3 = scmp.ne.s32.totalorder %s34_s10, %s845_s18  ;;  %p851_p5 = scmp.lt.s32.totalorder %s845_s18, %s845_s18 }
   0xd   :  { %p852_p6 = por %p851_p5, %p850_p4 }
   0xf   :  { %p853_p7 = pnand %p852_p6, %p846_p3 }
  0x11   :  { %856 = shalt.err (!%p853_p7)
}
  0x12   :  { %s976_s19 = smov 128   ;;  %s977_s20 = smov 8  }
  0x13   :  { %39 = dma.hbm_to_vmem [thread:$0]  %s1173_s1, 2048, %s34_s10, [#allocation6], %s976_s19, %s976_s19, %s977_s20  }
  0x14   :  { %s978_s23 = smov [#allocation8]   ;;  %s979_s25 = smov [#allocation2]  }
  0x15   :  { %s57_s24 = sshll.u32 %s978_s23, 4  ;;  %s24_s26 = sshll.u32 %s979_s25, 4  ;;  %s58_s24 = int_to_ptr.vmem [resolvable:$true] %s57_s24  ;;  %s25_s26 = int_to_ptr.vmem [resolvable:$true] %s24_s26 }
  0x16   :  { %s857_s29 = scalar_lea.hbm %s1175_s3, 2048 }
  0x17   :  { %p858_p8 = scmp.ne.s32.totalorder %s1175_s3, %s857_s29  ;;  %p861_p9 = scmp.lt.u32.totalorder %s857_s29, %s1175_s3 }
  0x19   :  { %p863_p10 = pnand %p861_p9, %p858_p8 }
  0x1b   :  { %866 = shalt.err (!%p863_p10)
}
  0x1c   :  { %s867_s1 = scalar_lea.vmem %s58_s24, 2048  ;;  %p872_p12 = scmp.lt.s32.totalorder %s58_s24, %s58_s24 }
  0x1d   :  { %p868_p11 = scmp.ne.s32.totalorder %s58_s24, %s867_s1  ;;  %p873_p13 = scmp.lt.s32.totalorder %s867_s1, %s867_s1 }
  0x1f   :  { %p874_p0 = por %p873_p13, %p872_p12 }
  0x21   :  { %p875_p1 = pnand %p874_p0, %p868_p11 }
  0x23   :  { %878 = shalt.err (!%p875_p1)
}
  0x24   :  { %63 = dma.hbm_to_vmem [thread:$0]  %s1175_s3, 2048, %s58_s24, [#allocation9], %s976_s19, %s976_s19, %s977_s20  }
  0x25   :  { %s879_s17 = scalar_lea.hbm %s1172_s0, 128 }
  0x26   :  { %p880_p2 = scmp.ne.s32.totalorder %s1172_s0, %s879_s17  ;;  %p883_p3 = scmp.lt.u32.totalorder %s879_s17, %s1172_s0 }
  0x28   :  { %p885_p4 = pnand %p883_p3, %p880_p2 }
  0x2a   :  { %888 = shalt.err (!%p885_p4)
}
  0x2b   :  { %s889_s25 = scalar_lea.vmem %s25_s26, 128  ;;  %p894_p6 = scmp.lt.s32.totalorder %s25_s26, %s25_s26 }
  0x2c   :  { %p890_p5 = scmp.ne.s32.totalorder %s25_s26, %s889_s25  ;;  %p895_p7 = scmp.lt.s32.totalorder %s889_s25, %s889_s25 }
  0x2e   :  { %p896_p8 = por %p895_p7, %p894_p6 }
  0x30   :  { %p897_p9 = pnand %p896_p8, %p890_p5 }
  0x32   :  { %900 = shalt.err (!%p897_p9)
}
  0x33   :  { %27 = dma.hbm_to_vmem [thread:$0]  %s1172_s0, 128, %s25_s26, [#allocation3]  }
  0x34   :  { %s980_s27 = smov [#allocation7]   ;;  %s981_s29 = smov [#allocation10]  }
  0x35   :  { %s45_s28 = sshll.u32 %s980_s27, 4  ;;  %s69_s30 = sshll.u32 %s981_s29, 4  ;;  %s46_s28 = int_to_ptr.vmem [resolvable:$true] %s45_s28  ;;  %s70_s30 = int_to_ptr.vmem [resolvable:$true] %s69_s30 }
  0x36   :  { %s901_s13 = scalar_lea.hbm %s1174_s2, 2048 }
  0x37   :  { %p902_p10 = scmp.ne.s32.totalorder %s1174_s2, %s901_s13  ;;  %p905_p11 = scmp.lt.u32.totalorder %s901_s13, %s1174_s2 }
  0x39   :  { %p907_p12 = pnand %p905_p11, %p902_p10 }
  0x3b   :  { %910 = shalt.err (!%p907_p12)
}
  0x3c   :  { %s911_s0 = scalar_lea.vmem %s46_s28, 2048  ;;  %p916_p0 = scmp.lt.s32.totalorder %s46_s28, %s46_s28 }
  0x3d   :  { %p912_p13 = scmp.ne.s32.totalorder %s46_s28, %s911_s0  ;;  %p917_p1 = scmp.lt.s32.totalorder %s911_s0, %s911_s0 }
  0x3f   :  { %p918_p2 = por %p917_p1, %p916_p0 }
  0x41   :  { %p919_p3 = pnand %p918_p2, %p912_p13 }
  0x43   :  { %922 = shalt.err (!%p919_p3)
}
  0x44   :  { %51 = dma.hbm_to_vmem [thread:$0]  %s1174_s2, 2048, %s46_s28, [#allocation6], %s976_s19, %s976_s19, %s977_s20  }
  0x45   :  { %s923_s21 = scalar_lea.hbm %s1176_s4, 2048 }
  0x46   :  { %p924_p4 = scmp.ne.s32.totalorder %s1176_s4, %s923_s21  ;;  %p927_p5 = scmp.lt.u32.totalorder %s923_s21, %s1176_s4 }
  0x48   :  { %p929_p6 = pnand %p927_p5, %p924_p4 }
  0x4a   :  { %932 = shalt.err (!%p929_p6)
}
  0x4b   :  { %s933_s24 = scalar_lea.vmem %s70_s30, 2048  ;;  %p938_p8 = scmp.lt.s32.totalorder %s70_s30, %s70_s30 }
  0x4c   :  { %p934_p7 = scmp.ne.s32.totalorder %s70_s30, %s933_s24  ;;  %p939_p9 = scmp.lt.s32.totalorder %s933_s24, %s933_s24 }
  0x4e   :  { %p940_p10 = por %p939_p9, %p938_p8 }
  0x50   :  { %p941_p11 = pnand %p940_p10, %p934_p7 }
  0x52   :  { %944 = shalt.err (!%p941_p11)
}
  0x53   :  { %75 = dma.hbm_to_vmem [thread:$0]  %s1176_s4, 2048, %s70_s30, [#allocation9], %s976_s19, %s976_s19, %s977_s20  }
  0x54   :  { %967 = dma.done.wait [#allocation3], 128  }
  0x55   :  { %968 = vsyncadd [#allocation3], 4294967168 }
  0x56   :  { %969 = dma.done.wait [#allocation6], 4096  }
  0x57   :  { %970 = vsyncadd [#allocation6], 4294963200 }
  0x58   :  { %971 = dma.done.wait [#allocation9], 4096  }
  0x59   :  { %972 = vsyncadd [#allocation9], 4294963200  ;;  %v982_v0 = vmov 0.0|0.0   ;;  %vm983_vm0 = vmmov 0   ;;  %v984_v1 = vmov 0.0   ;;  %v100_v2 = vld [vmem:[#allocation5] sm:$0xff] }
  0x5a   :  { %724 = vmatprep.subr.bf16.mxu0 %v982_v0  ;;  %616 = vmatprep.mubr.msk.f32.mxu0 %vm983_vm0, %v984_v1  ;;  %v101_v3 = vld [vmem:[#allocation5 + $0x8] sm:$0xff]  ;;  %v102_v4 = vld [vmem:[#allocation5 + $0x10] sm:$0xff]  ;;  %v103_v6 = vld [vmem:[#allocation5 + $0x18] sm:$0xff] }
  0x5b   :  { %748 = vmatprep.subr.bf16.mxu1 %v982_v0  ;;  %651 = vmatprep.mubr.msk.f32.mxu1 %vm983_vm0, %v984_v1  ;;  %v725_v5 = vpack.c.bf16 %v101_v3, %v100_v2  ;;  %v728_v7 = vpack.c.bf16 %v103_v6, %v102_v4  ;;  %v104_v8 = vld [vmem:[#allocation5 + $0x20] sm:$0xff]  ;;  %v105_v9 = vld [vmem:[#allocation5 + $0x28] sm:$0xff]  ;;  %v198_v12 = vld [vmem:[#allocation7 + $0x10] sm:$0xff] }
  0x5c   :  { %v196_v10 = vld [vmem:[#allocation7] sm:$0xff]  ;;  %v197_v11 = vld [vmem:[#allocation7 + $0x8] sm:$0xff]  ;;  %v199_v13 = vld [vmem:[#allocation7 + $0x18] sm:$0xff]  ;;  %v731_v14 = vpack.c.bf16 %v105_v9, %v104_v8 }
  0x5d   :  { %726 = vmatpush3.bf16.msra.mxu0 %v725_v5  ;;  %v749_v15 = vpack.c.bf16 %v197_v11, %v196_v10  ;;  %v106_v16 = vld [vmem:[#allocation5 + $0x30] sm:$0xff]  ;;  %v107_v17 = vld [vmem:[#allocation5 + $0x38] sm:$0xff]  ;;  %v752_v18 = vpack.c.bf16 %v199_v13, %v198_v12  ;;  %v200_v19 = vld [vmem:[#allocation7 + $0x20] sm:$0xff] }
  0x5e   :  { %727 = vmatprep.subr.bf16.mxu0 %v982_v0  ;;  %v201_v20 = vld [vmem:[#allocation7 + $0x28] sm:$0xff]  ;;  %v734_v21 = vpack.c.bf16 %v107_v17, %v106_v16  ;;  %v108_v22 = vld [vmem:[#allocation5 + $0x40] sm:$0xff]  ;;  %v202_v25 = vld [vmem:[#allocation7 + $0x30] sm:$0xff] }
  0x5f   :  { %750 = vmatpush3.bf16.msra.mxu1 %v749_v15  ;;  %v109_v23 = vld [vmem:[#allocation5 + $0x48] sm:$0xff]  ;;  %v755_v24 = vpack.c.bf16 %v201_v20, %v200_v19  ;;  %v203_v26 = vld [vmem:[#allocation7 + $0x38] sm:$0xff]  ;;  %v110_v28 = vld [vmem:[#allocation5 + $0x50] sm:$0xff] }
  0x60   :  { %751 = vmatprep.subr.bf16.mxu1 %v982_v0  ;;  %v737_v27 = vpack.c.bf16 %v109_v23, %v108_v22  ;;  %v111_v29 = vld [vmem:[#allocation5 + $0x58] sm:$0xff]  ;;  %v758_v30 = vpack.c.bf16 %v203_v26, %v202_v25  ;;  %v204_v31 = vld [vmem:[#allocation7 + $0x40] sm:$0xff]  ;;  %v205_v32 = vld [vmem:[#allocation7 + $0x48] sm:$0xff] }
  0x61   :  { %729 = vmatpush3.bf16.msra.mxu0 %v728_v7  ;;  %v740_v33 = vpack.c.bf16 %v111_v29, %v110_v28  ;;  %v112_v34 = vld [vmem:[#allocation5 + $0x60] sm:$0xff]  ;;  %v113_v35 = vld [vmem:[#allocation5 + $0x68] sm:$0xff]  ;;  %v761_v36 = vpack.c.bf16 %v205_v32, %v204_v31  ;;  %v206_v37 = vld [vmem:[#allocation7 + $0x50] sm:$0xff] }
  0x62   :  { %730 = vmatprep.subr.bf16.mxu0 %v982_v0  ;;  %v207_v38 = vld [vmem:[#allocation7 + $0x58] sm:$0xff]  ;;  %v743_v39 = vpack.c.bf16 %v113_v35, %v112_v34  ;;  %v114_v40 = vld [vmem:[#allocation5 + $0x70] sm:$0xff]  ;;  %v208_v43 = vld [vmem:[#allocation7 + $0x60] sm:$0xff] }
  0x63   :  { %753 = vmatpush3.bf16.msra.mxu1 %v752_v18  ;;  %v115_v41 = vld [vmem:[#allocation5 + $0x78] sm:$0xff]  ;;  %v764_v42 = vpack.c.bf16 %v207_v38, %v206_v37  ;;  %v209_v44 = vld [vmem:[#allocation7 + $0x68] sm:$0xff]  ;;  %v210_v48 = vld [vmem:[#allocation7 + $0x70] sm:$0xff] }
  0x64   :  { %754 = vmatprep.subr.bf16.mxu1 %v982_v0  ;;  %v746_v45 = vpack.c.bf16 %v115_v41, %v114_v40  ;;  %v767_v46 = vpack.c.bf16 %v209_v44, %v208_v43  ;;  %v99_v47 = vld [vmem:[#allocation2] sm:$0xff]  ;;  %v292_v51 = vld [vmem:[#allocation8] sm:$0xff]  ;;  %v293_v52 = vld [vmem:[#allocation8 + $0x8] sm:$0xff] }
  0x65   :  { %732 = vmatpush3.bf16.msra.mxu0 %v731_v14  ;;  %v211_v49 = vld [vmem:[#allocation7 + $0x78] sm:$0xff]  ;;  %v294_v53 = vld [vmem:[#allocation8 + $0x10] sm:$0xff]  ;;  %v773_v54 = vpack.c.bf16 %v293_v52, %v292_v51  ;;  %v296_v57 = vld [vmem:[#allocation8 + $0x20] sm:$0xff] }
  0x66   :  { %733 = vmatprep.subr.bf16.mxu0 %v982_v0  ;;  %v770_v50 = vpack.c.bf16 %v211_v49, %v210_v48  ;;  %v295_v55 = vld [vmem:[#allocation8 + $0x18] sm:$0xff]  ;;  %v297_v58 = vld [vmem:[#allocation8 + $0x28] sm:$0xff]  ;;  %v298_v60 = vld [vmem:[#allocation8 + $0x30] sm:$0xff] }
  0x67   :  { %756 = vmatpush3.bf16.msra.mxu1 %v755_v24  ;;  %v776_v56 = vpack.c.bf16 %v295_v55, %v294_v53  ;;  %v779_v59 = vpack.c.bf16 %v297_v58, %v296_v57  ;;  %v299_v61 = vld [vmem:[#allocation8 + $0x38] sm:$0xff]  ;;  %v300_v63 = vld [vmem:[#allocation8 + $0x40] sm:$0xff]  ;;  %v301_v2 = vld [vmem:[#allocation8 + $0x48] sm:$0xff]  ;;  %v481_v53 = vlaneseq }
  0x68   :  { %757 = vmatprep.subr.bf16.mxu1 %v982_v0  ;;  %v782_v62 = vpack.c.bf16 %v299_v61, %v298_v60  ;;  %v785_v3 = vpack.c.bf16 %v301_v2, %v300_v63  ;;  %v302_v4 = vld [vmem:[#allocation8 + $0x50] sm:$0xff]  ;;  %v303_v5 = vld [vmem:[#allocation8 + $0x58] sm:$0xff]  ;;  %v304_v7 = vld [vmem:[#allocation8 + $0x60] sm:$0xff] }
  0x69   :  { %735 = vmatpush3.bf16.msra.mxu0 %v734_v21  ;;  %v788_v6 = vpack.c.bf16 %v303_v5, %v302_v4  ;;  %v305_v8 = vld [vmem:[#allocation8 + $0x68] sm:$0xff]  ;;  %v512_v10 = vld [vmem:[%s1177_s5] ss:$0 sm:$0xff]  ;;  %v306_v16 = vld [vmem:[#allocation8 + $0x70] sm:$0xff] }
  0x6a   :  { %736 = vmatprep.subr.bf16.mxu0 %v982_v0  ;;  %v791_v9 = vpack.c.bf16 %v305_v8, %v304_v7  ;;  %v307_v17 = vld [vmem:[#allocation8 + $0x78] sm:$0xff]  ;;  %v388_v19 = vld [vmem:[#allocation10] sm:$0xff]  ;;  %v389_v20 = vld [vmem:[#allocation10 + $0x8] sm:$0xff] }
  0x6b   :  { %759 = vmatpush3.bf16.msra.mxu1 %v758_v30  ;;  %v794_v18 = vpack.c.bf16 %v307_v17, %v306_v16  ;;  %v390_v21 = vld [vmem:[#allocation10 + $0x10] sm:$0xff]  ;;  %v797_v22 = vpack.c.bf16 %v389_v20, %v388_v19  ;;  %v391_v23 = vld [vmem:[#allocation10 + $0x18] sm:$0xff]  ;;  %v392_v25 = vld [vmem:[#allocation10 + $0x20] sm:$0xff] }
  0x6c   :  { %760 = vmatprep.subr.bf16.mxu1 %v982_v0  ;;  %v800_v24 = vpack.c.bf16 %v391_v23, %v390_v21  ;;  %v393_v26 = vld [vmem:[#allocation10 + $0x28] sm:$0xff]  ;;  %v395_v28 = vld [vmem:[#allocation10 + $0x38] sm:$0xff]  ;;  %v396_v30 = vld [vmem:[#allocation10 + $0x40] sm:$0xff] }
  0x6d   :  { %738 = vmatpush3.bf16.msra.mxu0 %v737_v27  ;;  %v803_v27 = vpack.c.bf16 %v393_v26, %v392_v25  ;;  %v397_v31 = vld [vmem:[#allocation10 + $0x48] sm:$0xff]  ;;  %v399_v34 = vld [vmem:[#allocation10 + $0x58] sm:$0xff] }
  0x6e   :  { %739 = vmatprep.subr.bf16.mxu0 %v982_v0  ;;  %v809_v32 = vpack.c.bf16 %v397_v31, %v396_v30  ;;  %v401_v37 = vld [vmem:[#allocation10 + $0x68] sm:$0xff]  ;;  %v514_v48 = vld [vmem:[%s1179_s7] ss:$0 sm:$0xff]  ;;  %s985_s7 = smov [#allocation11]  }
  0x6f   :  { %762 = vmatpush3.bf16.msra.mxu1 %v761_v36  ;;  %v400_v36 = vld [vmem:[#allocation10 + $0x60] sm:$0xff]  ;;  %v515_v55 = vld [vmem:[%s1180_s8] ss:$0 sm:$0xff]  ;;  %s501_s11 = sshll.u32 %s985_s7, 4  ;;  %s502_s11 = int_to_ptr.vmem [resolvable:$true] %s501_s11 }
  0x70   :  { %763 = vmatprep.subr.bf16.mxu1 %v982_v0  ;;  %v815_v38 = vpack.c.bf16 %v401_v37, %v400_v36  ;;  %s945_s8 = scalar_lea.vmem %s502_s11, 128  ;;  %p950_p13 = scmp.lt.s32.totalorder %s502_s11, %s502_s11 }
  0x71   :  { %741 = vmatpush3.bf16.msra.mxu0 %v740_v33  ;;  %v398_v33 = vld [vmem:[#allocation10 + $0x50] sm:$0xff]  ;;  %p946_p12 = scmp.ne.s32.totalorder %s502_s11, %s945_s8  ;;  %p951_p0 = scmp.lt.s32.totalorder %s945_s8, %s945_s8 }
  0x72   :  { %742 = vmatprep.subr.bf16.mxu0 %v982_v0  ;;  %v812_v35 = vpack.c.bf16 %v399_v34, %v398_v33 }
  0x73   :  { %765 = vmatpush3.bf16.msra.mxu1 %v764_v42  ;;  %p952_p1 = por %p951_p0, %p950_p13 }
  0x74   :  { %766 = vmatprep.subr.bf16.mxu1 %v982_v0 }
  0x75   :  { %744 = vmatpush3.bf16.msra.mxu0 %v743_v39  ;;  %v513_v39 = vld [vmem:[%s1178_s6] ss:$0 sm:$0xff]  ;;  %p953_p2 = pnand %p952_p1, %p946_p12 }
  0x76   :  { %745 = vmatprep.subr.bf16.mxu0 %v982_v0 }
  0x77   :  { %768 = vmatpush3.bf16.msra.mxu1 %v767_v46  ;;  %v403_v46 = vld [vmem:[#allocation10 + $0x78] sm:$0xff] }
  0x78   :  { %769 = vmatprep.subr.bf16.mxu1 %v982_v0 }
  0x79   :  { %747 = vmatpush3.bf16.msra.mxu0 %v746_v45  ;;  %v402_v45 = vld [vmem:[#allocation10 + $0x70] sm:$0xff] }
  0x7a   :  { %772 = vmatprep.subr.bf16.mxu0 %v982_v0 }
  0x7b   :  { %771 = vmatpush3.bf16.msra.mxu1 %v770_v50 }
  0x7c   :  { %617 = vmatmul.mubr.f32.vlgmr.msra.gmra.mrb[0].mxu0 %v99_v47  ;;  %796 = vmatprep.subr.bf16.mxu1 %v982_v0  ;;  %v818_v47 = vpack.c.bf16 %v403_v46, %v402_v45 }
  0x7d   :  { %686 = vmatprep.mubr.msk.f32.mxu0 %vm983_vm0, %v984_v1  ;;  %774 = vmatpush3.bf16.msra.mxu0 %v773_v54  ;;  %v482_v54 = vand.u32 127, %v481_v53 }
  0x7e   :  { %775 = vmatprep.subr.bf16.mxu0 %v982_v0 }
  0x7f   :  { %vm483_vm4 = vcmp.lt.s32.totalorder %v482_v54, 16 }
  0x81   :  { %777 = vmatpush3.bf16.msra.mxu0 %v776_v56 }
  0x82   :  { %778 = vmatprep.subr.bf16.mxu0 %v982_v0 }
  0x85   :  { %780 = vmatpush3.bf16.msra.mxu0 %v779_v59 }
  0x86   :  { %781 = vmatprep.subr.bf16.mxu0 %v982_v0 }
  0x89   :  { %783 = vmatpush3.bf16.msra.mxu0 %v782_v62 }
  0x8a   :  { %784 = vmatprep.subr.bf16.mxu0 %v982_v0 }
  0x8d   :  { %786 = vmatpush3.bf16.msra.mxu0 %v785_v3 }
  0x8e   :  { %787 = vmatprep.subr.bf16.mxu0 %v982_v0 }
  0x91   :  { %789 = vmatpush3.bf16.msra.mxu0 %v788_v6 }
  0x92   :  { %790 = vmatprep.subr.bf16.mxu0 %v982_v0 }
  0x95   :  { %792 = vmatpush3.bf16.msra.mxu0 %v791_v9 }
  0x96   :  { %793 = vmatprep.subr.bf16.mxu0 %v982_v0 }
  0x99   :  { %795 = vmatpush3.bf16.msra.mxu0 %v794_v18 }
 0x14f   :  { %v189_v11 = vpop.f32.mrb[0].mxu0 }
 0x150   :  { %v190_v12 = vadd.f32 %v512_v10, %v189_v11  ;;  %v618_v13 = vpop.f32.mrb[1].mxu0 }
 0x152   :  { %v194_v14 = vmul.f32 0.01, %v190_v12  ;;  %vm193_vm1 = vcmp.gt.f32.partialorder %v190_v12, 0.0 }
 0x154   :  { %v195_v15 = vsel %vm193_vm1, %v190_v12, %v194_v14 }
 0x155   :  { %652 = vmatmul.mubr.f32.vlgmr.msra.gmra.mrb[0].mxu1 %v195_v15 }
 0x156   :  { %721 = vmatprep.mubr.msk.f32.mxu1 %vm983_vm0, %v984_v1  ;;  %798 = vmatpush3.bf16.msra.mxu1 %v797_v22  ;;  %v394_v1 = vld [vmem:[#allocation10 + $0x30] sm:$0xff] }
 0x157   :  { %799 = vmatprep.subr.bf16.mxu1 %v982_v0  ;;  %v806_v29 = vpack.c.bf16 %v395_v28, %v394_v1 }
 0x15a   :  { %801 = vmatpush3.bf16.msra.mxu1 %v800_v24 }
 0x15b   :  { %802 = vmatprep.subr.bf16.mxu1 %v982_v0 }
 0x15e   :  { %804 = vmatpush3.bf16.msra.mxu1 %v803_v27 }
 0x15f   :  { %805 = vmatprep.subr.bf16.mxu1 %v982_v0 }
 0x162   :  { %807 = vmatpush3.bf16.msra.mxu1 %v806_v29 }
 0x163   :  { %808 = vmatprep.subr.bf16.mxu1 %v982_v0 }
 0x166   :  { %810 = vmatpush3.bf16.msra.mxu1 %v809_v32 }
 0x167   :  { %811 = vmatprep.subr.bf16.mxu1 %v982_v0 }
 0x16a   :  { %813 = vmatpush3.bf16.msra.mxu1 %v812_v35 }
 0x16b   :  { %814 = vmatprep.subr.bf16.mxu1 %v982_v0 }
 0x16e   :  { %816 = vmatpush3.bf16.msra.mxu1 %v815_v38 }
 0x16f   :  { %817 = vmatprep.subr.bf16.mxu1 %v982_v0 }
 0x172   :  { %819 = vmatpush3.bf16.msra.mxu1 %v818_v47 }
 0x228   :  { %v285_v40 = vpop.f32.mrb[0].mxu1 }
 0x229   :  { %v286_v41 = vadd.f32 %v513_v39, %v285_v40  ;;  %v653_v42 = vpop.f32.mrb[1].mxu1 }
 0x22b   :  { %vm289_vm2 = vcmp.gt.f32.partialorder %v286_v41, 0.0  ;;  %v290_v43 = vmul.f32 0.01, %v286_v41 }
 0x22d   :  { %v291_v44 = vsel %vm289_vm2, %v286_v41, %v290_v43 }
 0x22e   :  { %687 = vmatmul.mubr.f32.vlgmr.msra.gmra.mrb[2].mxu0 %v291_v44 }
 0x301   :  { %v381_v0 = vpop.f32.mrb[2].mxu0 }
 0x302   :  { %v382_v49 = vadd.f32 %v514_v48, %v381_v0  ;;  %v688_v50 = vpop.f32.mrb[3].mxu0 }
 0x304   :  { %vm385_vm3 = vcmp.gt.f32.partialorder %v382_v49, 0.0  ;;  %v386_v51 = vmul.f32 0.01, %v382_v49 }
 0x306   :  { %v387_v52 = vsel %vm385_vm3, %v382_v49, %v386_v51 }
 0x307   :  { %722 = vmatmul.mubr.f32.vlgmr.msra.gmra.mrb[2].mxu1 %v387_v52 }
 0x3da   :  { %v477_v56 = vpop.f32.mrb[2].mxu1 }
 0x3db   :  { %v478_v57 = vadd.f32 %v515_v55, %v477_v56  ;;  %v723_v58 = vpop.f32.mrb[3].mxu1 }
 0x3dd   :  { %v484_v59 = vsel %vm483_vm4, %v478_v57, -1e+30 }
 0x3de   :  { %485 = vmax.xlane.f32.xlu0 %v484_v59 }
 0x46b   :  { %v486_v60 = vpop.xlane.xlu0 %485 }
 0x46c   :  { %v487_v61 = vsub.f32 %v484_v59, %v486_v60 }
 0x46e   :  { %v488_v62 = vmul.f32 1.442695, %v487_v61 }
 0x470   :  { %831 = vpow2.f32 %v488_v62 }
 0x47a   :  { %v832_v63 = vpop.eup %831 }
 0x47b   :  { %490 = vadd.xlane.f32.xlu0 %v832_v63 }
 0x508   :  { %v491_v2 = vpop.xlane.xlu0 %490 }
 0x509   :  { %833 = vrcp.f32 %v491_v2 }
 0x513   :  { %v834_v3 = vpop.eup %833 }
 0x514   :  { %v493_v4 = vmul.f32 %v834_v3, %v832_v63 }
 0x516   :  { %494 = vst [vmem:[#allocation11] sm:$0xff] %v493_v4 }
 0x517   :  { %956 = shalt.err (!%p953_p2)
}
 0x518   :  { %s957_s1 = scalar_lea.hbm %s1181_s9, 128 }
 0x519   :  { %p958_p3 = scmp.ne.s32.totalorder %s1181_s9, %s957_s1  ;;  %p961_p4 = scmp.lt.u32.totalorder %s957_s1, %s1181_s9 }
 0x51b   :  { %p963_p5 = pnand %p961_p4, %p958_p3 }
 0x51d   :  { %966 = shalt.err (!%p963_p5)
}
 0x51e   :  { %504 = dma.vmem_to_hbm [thread:$0]  %s502_s11, 128, %s1181_s9, [#allocation4]  }
 0x51f   :  { %973 = dma.done.wait [#allocation4], 128  }
 0x520   :  { %974 = vsyncadd [#allocation4], 4294967168 }
 0x521   :  { %508 = vsyncpa [#allocation3], 1 }
 0x522   :  { %509 = vsyncpa [#allocation6], 1 }
 0x523   :  { %510 = vsyncpa [#allocation9], 1 }
 0x524   :  { %511 = vsyncpa [#allocation4], 1 }

</bundles_post_ra>
